<compile_context>
chip_gen: v5e
topology: v5e:2x2
jax: 0.10.0
libtpu: 0.0.40
codegen_flags: <defaults>
</compile_context>

<pallas_src>
import math

import jax
import jax.numpy as jnp
from jax.experimental import pallas as pl
from jax.experimental.pallas import tpu as pltpu

_MiB = 1024 * 1024


# ------------------------------ "module init" --------------------------------

def make_sinusoidal_pe(max_len: int, d_model: int, dtype=jnp.float32) -> jnp.ndarray:
    """Equivalent of PositionalEncoding.__init__'s registered `pe` buffer.

    Shape [max_len, 1, d_model] (same as the PyTorch buffer), stored in `dtype`
    so the kernel never has to cast it per block.
    """
    position = jnp.arange(max_len, dtype=jnp.float32)[:, None]              # [L, 1]
    div_term = jnp.exp(jnp.arange(0, d_model, 2, dtype=jnp.float32)
                       * (-math.log(10000.0) / d_model))                    # [D/2]
    angles = position * div_term                                            # [L, D/2]
    pe = jnp.zeros((max_len, d_model), jnp.float32)
    pe = pe.at[:, 0::2].set(jnp.sin(angles))
    pe = pe.at[:, 1::2].set(jnp.cos(angles))
    return pe.astype(dtype)[:, None, :]                                     # [L, 1, D]


# --------------------------------- kernel -------------------------------------

def _pos_enc_kernel(x_ref, pe_ref, o_ref):
    # x_ref/o_ref: (ts, tb, D)   pe_ref: (ts, 1, D)
    # Broadcast of pe over the batch (sublane) axis happens here, in vregs.
    o_ref[...] = x_ref[...] + pe_ref[...]


# -------------------------------- wrapper -------------------------------------

def _vmem_capacity_bytes() -> int:
    """Per-generation VMEM capacity, with a v7x-safe fallback."""
    try:
        info = pltpu.get_tpu_info()
        cap = int(getattr(info, "vmem_capacity_bytes", 64 * _MiB))
        if cap <= 0:
            cap = 64 * _MiB
    except Exception:
        cap = 64 * _MiB
    return cap


def _pick_tiles(S, B, D, dtype, block_budget):
    """Pick (tile_s, tile_b) so the double-buffered block footprint
    (2 x (x + out + pe)) stays within `block_budget` bytes."""
    itemsize = jnp.dtype(dtype).itemsize
    sub = max(8, 32 // itemsize)            # sublane pack: f32 -> 8, bf16 -> 16

    # Batch tile: full batch if it fits a vreg's sublanes, else a pack-multiple.
    if B <= sub:
        tb = B                              # full dim (always legal)
    else:
        tb = min(128, (B // sub) * sub)

    # Seq tile from the VMEM budget (double-buffered x + out + pe per seq row).
    per_s_row = 2 * (2 * tb + 1) * D * itemsize
    ts = max(1, block_budget // per_s_row)
    grid_b = -(-B // tb)
    if ts >= S:
        ts = S
        # Keep >=2 blocks on at least one parallel axis (v7x megacore sharding).
        if S >= 16 and grid_b < 2:
            half = ((S // 2) // 8) * 8
            if half >= 8:
                ts = half
    else:
        ts = max(8, (ts // 8) * 8)          # multiple of 8 (block-shape rule)
    ts = min(ts, S)
    return int(ts), int(tb)


def positional_encoding(x, pe, *, dropout_p: float = 0.1, donate_x: bool = False,
                        tile_s: int = None, tile_b: int = None):
    """dropout(x + pe[:seq_len]) with eval-mode (identity) dropout.

    x : [seq_len, batch, d_model]
    pe: [max_len, 1, d_model] sinusoidal buffer (max_len >= seq_len), ideally
        already in x.dtype (as produced by make_sinusoidal_pe).
    """
    S, B, D = x.shape
    assert pe.ndim == 3 and pe.shape[1] == 1 and pe.shape[2] == D
    assert pe.shape[0] >= S, "seq_len exceeds max_len of the pe buffer"

    if pe.dtype != x.dtype:
        # One-time cast; prefer building pe in x.dtype at init to avoid this copy.
        pe = pe.astype(x.dtype)

    itemsize = jnp.dtype(x.dtype).itemsize
    cap = _vmem_capacity_bytes()
    # Total double-buffered block footprint budget, per generation.
    block_budget = 24 * _MiB if cap >= 128 * _MiB else 12 * _MiB

    auto_ts, auto_tb = _pick_tiles(S, B, D, x.dtype, block_budget)
    ts = tile_s if tile_s is not None else auto_ts
    tb = tile_b if tile_b is not None else auto_tb

    grid = (pl.cdiv(S, ts), pl.cdiv(B, tb))   # seq outer, batch inner (pe reuse)

    # Explicit scoped-VMEM limit: >= actual footprint + headroom, <= half physical.
    footprint = 2 * (2 * ts * tb * D + ts * 1 * D) * itemsize
    vmem_limit = int(min(cap // 2, max(32 * _MiB, footprint + 16 * _MiB)))

    nbytes = (2 * S * B * D + S * D) * itemsize   # read x, write out, read pe once

    extra = {"input_output_aliases": {0: 0}} if donate_x else {}

    out = pl.pallas_call(
        _pos_enc_kernel,
        out_shape=jax.ShapeDtypeStruct((S, B, D), x.dtype),
        grid=grid,
        in_specs=[
            pl.BlockSpec((ts, tb, D), lambda i, j: (i, j, 0)),   # x tile
            pl.BlockSpec((ts, 1, D), lambda i, j: (i, 0, 0)),    # pe tile (batch-invariant)
        ],
        out_specs=pl.BlockSpec((ts, tb, D), lambda i, j: (i, j, 0)),
        compiler_params=pltpu.CompilerParams(
            dimension_semantics=("parallel", "parallel"),
            vmem_limit_bytes=vmem_limit),
        cost_estimate=pl.CostEstimate(
            flops=S * B * D, transcendentals=0, bytes_accessed=nbytes),
        **extra,
    )(x, pe)

    # TODO(synk): training-mode dropout (p=dropout_p) would need pltpu.prng_seed /
    # pltpu.prng_random_bits inside the kernel; treated as identity (eval semantics).
    del dropout_p
    return out


# ---------------------------------- demo --------------------------------------

if __name__ == "__main__":
    # Primary shape: sublane-full (batch % 8 == 0) and lane-dense (d_model % 128 == 0),
    # grid = (2, 1) so at least one parallel axis has >= 2 blocks.
    seq_len, batch, d_model, max_len = 16, 8, 128, 64

    key = jax.random.PRNGKey(0)
    x = jax.random.normal(key, (seq_len, batch, d_model), jnp.float32)

    pe = make_sinusoidal_pe(max_len, d_model, dtype=x.dtype)   # "register_buffer"
    y = jax.block_until_ready(positional_encoding(x, pe))

    # pure-JAX reference: x + pe[:S] broadcast over batch (dropout = identity)
    ref = x + pe[:seq_len]
    assert y.shape == (seq_len, batch, d_model)
    assert bool(jnp.all(jnp.isfinite(y)))
    assert bool(jnp.allclose(y, ref, atol=1e-6, rtol=1e-6))

    # Secondary odd shape: partial/full-dim blocks, tiny batch, d_model < 128
    # (correct via full-dim blocks + edge masking; slower masked-store path).
    s2, b2, d2 = 9, 2, 32
    x2 = jax.random.normal(jax.random.PRNGKey(1), (s2, b2, d2), jnp.float32)
    pe2 = make_sinusoidal_pe(max_len, d2, dtype=x2.dtype)
    y2 = jax.block_until_ready(positional_encoding(x2, pe2))
    ref2 = x2 + pe2[:s2]
    assert bool(jnp.allclose(y2, ref2, atol=1e-6, rtol=1e-6))

    print("KERNEL_OK")
</pallas_src>

<mosaic_0001>
module attributes {stable_mosaic.version = 11 : i64} {
  func.func @_pos_enc_kernel(%arg0: i32, %arg1: i32, %arg2: memref<8x8x128xf32, #tpu.memory_space<vmem>>, %arg3: memref<8x1x128xf32, #tpu.memory_space<vmem>>, %arg4: memref<8x8x128xf32, #tpu.memory_space<vmem>>) attributes {dimension_semantics = [#tpu.dimension_semantics<parallel>, #tpu.dimension_semantics<parallel>], iteration_bounds = array<i64: 2, 1>, scalar_prefetch = 0 : i64, scratch_operands = 0 : i64, tpu.core_type = #tpu.core_type<tc>, window_params = [{transform_indices = @transform_0, window_bounds = array<i64: 8, 8, 128>}, {transform_indices = @transform_1, window_bounds = array<i64: 8, 1, 128>}, {transform_indices = @transform_2, window_bounds = array<i64: 8, 8, 128>}]} {
    %c0 = arith.constant 0 : index
    %c0_0 = arith.constant 0 : index
    %c0_1 = arith.constant 0 : index
    %0 = vector.load %arg2[%c0, %c0_0, %c0_1] : memref<8x8x128xf32, #tpu.memory_space<vmem>>, vector<8x8x128xf32>
    %c0_2 = arith.constant 0 : index
    %c0_3 = arith.constant 0 : index
    %c0_4 = arith.constant 0 : index
    %1 = vector.load %arg3[%c0_2, %c0_3, %c0_4] : memref<8x1x128xf32, #tpu.memory_space<vmem>>, vector<8x1x128xf32>
    %2 = vector.broadcast %1 : vector<8x1x128xf32> to vector<8x8x128xf32>
    %3 = arith.addf %0, %2 : vector<8x8x128xf32>
    %c0_5 = arith.constant 0 : index
    %c0_6 = arith.constant 0 : index
    %c0_7 = arith.constant 0 : index
    %4 = vector.load %arg4[%c0_5, %c0_6, %c0_7] : memref<8x8x128xf32, #tpu.memory_space<vmem>>, vector<8x8x128xf32>
    tpu.vector_store %arg4[%c0_5, %c0_6, %c0_7], %3 {strides = array<i32>} : memref<8x8x128xf32, #tpu.memory_space<vmem>>, vector<8x8x128xf32>,
    return
  }
  func.func @transform_0(%arg0: i32, %arg1: i32) -> (i32, i32, i32) {
    %c0_i32 = arith.constant 0 : i32
    %c0_i32_0 = arith.constant 0 : i32
    return %arg0, %arg1, %c0_i32 : i32, i32, i32
  }
  func.func @transform_1(%arg0: i32, %arg1: i32) -> (i32, i32, i32) {
    %c0_i32 = arith.constant 0 : i32
    %c0_i32_0 = arith.constant 0 : i32
    %c0_i32_1 = arith.constant 0 : i32
    return %arg0, %c0_i32, %c0_i32_0 : i32, i32, i32
  }
  func.func @transform_2(%arg0: i32, %arg1: i32) -> (i32, i32, i32) {
    %c0_i32 = arith.constant 0 : i32
    %c0_i32_0 = arith.constant 0 : i32
    return %arg0, %arg1, %c0_i32 : i32, i32, i32
  }
}

</mosaic_0001>

<bundles_post_ra>
// kernel: tpu_custom_call.1
= control target key start
LH: loop header
LB: loop body
LE: loop exit
PB: predicated region body
PF: predicated region fallthrough
CT: control target
= control target key end

     0   :  { %s843_s0 = inlined_call_operand.hbm [shape: f32[16,8,128], index: 0, kind: input, shape index: {}]   ;;  %s844_s1 = inlined_call_operand.hbm [shape: f32[64,1,128], index: 1, kind: input, shape index: {}]   ;;  %s845_s2 = inlined_call_operand.hbm [shape: f32[16,8,128], index: 2, kind: output, shape index: {}]  }
   0x1   :  { %846 = sst [smem:[#allocation11_spill]] %s843_s0 }
   0x2   :  { %7 = vsyncpa [#allocation3], 0 }
   0x3   :  { %9 = vsyncpa [#allocation3 + $0x1], 0 }
   0x4   :  { %10 = vsyncpa [#allocation6], 0 }
   0x5   :  { %12 = vsyncpa [#allocation6 + $0x1], 0 }
   0x6   :  { %13 = vsyncpa [#allocation4], 0 }
   0x7   :  { %15 = vsyncpa [#allocation4 + $0x1], 0  ;;  %s676_s9 = smov 0   ;;  %s678_s10 = smov 0  }
   0x8   :  { %s680_s11 = smov 0   ;;  %s682_s12 = smov 0  }
   0x9   :  { %s684_s13 = smov 0   ;;  %s686_s14 = smov 0  }
   0xa LB: > { %s406_s15 = sadd.s32 4294967295, %s653_s14   ;;  %s407_s16 = sadd.s32 4294967294, %s653_s14   ;;  %s653_s14 = sphi %s686_s14, %s21_s14   ;;  %s649_s13 = sphi %s684_s13, %s857_s13   ;;  %s645_s12 = sphi %s682_s12, %s856_s12   ;;  %s641_s11 = sphi %s680_s11, %s855_s11   ;;  %s637_s10 = sphi %s678_s10, %s854_s10   ;;  %s633_s9 = sphi %s676_s9, %s853_s9  }
   0xb   : > { %s33_s17 = sadd.s32 1, %s649_s13  ;;  %s42_s18 = sadd.s32 1, %s641_s11 }
   0xc   : > { %p35_p0 = scmp.ge.s32.totalorder %s33_s17, 2  ;;  %p49_p1 = scmp.ne.s32.totalorder %s641_s11, %s637_s10 }
   0xd   : > { %p50_p2 = scmp.eq.s32.totalorder %s653_s14, 0  ;;  %p55_p3 = scmp.ne.s32.totalorder %s637_s10, %s633_s9 }
   0xe   : > { %s859_s17 = smov (%p35_p0, %s33_s17), 0  ;;  %p56_p5 = scmp.eq.s32.totalorder %s406_s15, 0 }
   0xf   : > { %p717_p4 = por %p50_p2, %p49_p1  ;;  %s37_s20 = ssub.s32 %s649_s13, %s859_s17 }
  0x10   : > { %p107_p6 = scmp.eq.s32.totalorder %s406_s15, 1  ;;  %p40_p7 = scmp.eq.s32.totalorder %s37_s20, 0 }
  0x11   : > { %p723_p8 = por %p56_p5, %p55_p3  ;;  %p113_p10 = scmp.eq.s32.totalorder %s407_s16, 1 }
  0x12   : > { %p727_p9 = por %p107_p6, %p49_p1  ;;  %p409_p12 = scmp.ge.s32.totalorder %s653_s14, 2 }
  0x13   : > { %s732_s23 = scalar_select %p40_p7, %s641_s11, %s42_s18  }
  0x14   : > { %p734_p11 = por %p113_p10, %p55_p3  ;;  %p443_p13 = scmp.lt.s32.totalorder %s653_s14, 2 }
  0x15   : > { %s741_s25 = sand.u32 1, %s641_s11   ;;  %s424_s27 = sshll.u32 %s649_s13, 6 }
  0x16   : > { %s410_s26 = sshll.u32 %s741_s25, 6  ;;  %s851_s0 = sld [smem:[#allocation11_spill]] }
  0x17   : > { %s137_s3 = scalar_lea.vmem [#allocation2], %s410_s26  ;;  %p750_p0 = pnand %p443_p13, %p717_p4 }
  0x18   : > { %s146_s4 = sshll.u32 %s137_s3, 4  ;;  %p415_p1 = scmp.ge.s32.totalorder %s653_s14, 1  ;;  %s147_s4 = int_to_ptr.vmem [resolvable:$true] %s146_s4 }
  0x19   : > { %s134_s7 = scalar_lea.sflag [#allocation3], %s741_s25  ;;  %s655_s8 = smov 128  }
  0x1a   : > { %s656_s15 = smov 8   ;;  %p175_p2 = scmp.lt.s32.totalorder %s653_s14, 3 }
  0x1b   : > { %s413_s16 = sshll.u32 %s741_s25, 3  ;;  %s414_s18 = sshll.u32 %s649_s13, 3 }
  0x1c   : > { %s143_s30 = scalar_lea.hbm %s851_s0, %s424_s27  ;;  %p176_p3 = pnand %p415_p1, %p175_p2 }
  0x1d   : > { %s144_s5 = sshll.u32 %s143_s30, 4  ;;  %s164_s19 = scalar_lea.hbm %s844_s1, %s414_s18  ;;  %s145_s5 = int_to_ptr.hbm [resolvable:$true] %s144_s5 }
  0x1e   : > { %435 = dma.hbm_to_vmem [thread:$0]  (!%p750_p0), %s145_s5, 1024, %s147_s4, %s134_s7, %s655_s8, %s655_s8, %s656_s15  }
  0x1f   : > { %s160_s27 = scalar_lea.vmem [#allocation5], %s413_s16  ;;  %s165_s29 = sshll.u32 %s164_s19, 4  ;;  %s166_s29 = int_to_ptr.hbm [resolvable:$true] %s165_s29 }
  0x20   : > { %s167_s28 = sshll.u32 %s160_s27, 4  ;;  %s157_s30 = scalar_lea.sflag [#allocation6], %s741_s25  ;;  %s168_s28 = int_to_ptr.vmem [resolvable:$true] %s167_s28 }
  0x21   : > { %s657_s3 = smov 16   ;;  %s658_s0 = smov 1  }
  0x22   : > { %438 = dma.hbm_to_vmem [thread:$0]  (!%p750_p0), %s166_s29, 128, %s168_s28, %s157_s30, %s657_s3, %s657_s3, %s658_s0  }
  0x23   : > { %179 = sbr.rel (%p176_p3) target bundleno = 61 (0x3d), region = 28  ;;  %s768_s4 = sand.u32 (!%p176_p3), 1, %s637_s10  }
  0x24   : > { %s416_s5 = sshll.u32 (!%p176_p3), %s768_s4, 6  ;;  %s182_s7 = scalar_lea.sflag (!%p176_p3), [#allocation3], %s768_s4 }
  0x25   : > { %s772_s8 = scalar_lea.vmem (!%p176_p3), [#allocation2], %s416_s5 }
  0x28   : > { %620 = dma.done.wait (%p723_p8), %s182_s7, 1024  }
  0x29   : > { %622 = vsyncadd (%p723_p8), %s182_s7, 4294966272  ;;  %s417_s0 = sshll.u32 %s768_s4, 3  ;;  %s192_s25 = scalar_lea.sflag [#allocation6], %s768_s4 }
  0x2a   : > { %s780_s6 = scalar_lea.vmem [#allocation5], %s417_s0 }
  0x2b   : > { %624 = dma.done.wait (%p723_p8), %s192_s25, 128  }
  0x2c   : > { %626 = vsyncadd (%p723_p8), %s192_s25, 4294967168  ;;  %s425_s15 = sshll.u32 %s645_s12, 6  ;;  %v225_v0 = vld [vmem:[%s772_s8] sm:$0xff]  ;;  %v226_v2 = vld [vmem:[%s772_s8 + $0x8] sm:$0xff]  ;;  %s221_s20 = scalar_lea.vmem [#allocation7], %s416_s5 }
  0x2d   : > { %v499_v1 = vld [vmem:[%s780_s6] ss:$0 sm:$0xff]  ;;  %v500_v3 = vld [vmem:[%s780_s6 + $0x1] ss:$0 sm:$0xff]  ;;  %s794_s21 = scalar_lea.hbm %s845_s2, %s425_s15  ;;  %v227_v5 = vld [vmem:[%s772_s8 + $0x10] sm:$0xff]  ;;  %s295_s12 = sshll.u32 %s221_s20, 4  ;;  %s296_s12 = int_to_ptr.vmem [resolvable:$true] %s295_s12 }
  0x2e   : > { %v265_v4 = vadd.f32 %v499_v1, %v225_v0  ;;  %v501_v6 = vld [vmem:[%s780_s6 + $0x2] ss:$0 sm:$0xff]  ;;  %v266_v7 = vadd.f32 %v500_v3, %v226_v2  ;;  %v228_v8 = vld [vmem:[%s772_s8 + $0x18] sm:$0xff]  ;;  %v502_v9 = vld [vmem:[%s780_s6 + $0x3] ss:$0 sm:$0xff]  ;;  %s297_s26 = sshll.u32 %s794_s21, 4  ;;  %s298_s26 = int_to_ptr.hbm [resolvable:$true] %s297_s26 }
  0x2f   : > { %v267_v10 = vadd.f32 %v501_v6, %v227_v5  ;;  %v229_v11 = vld [vmem:[%s772_s8 + $0x20] sm:$0xff]  ;;  %v268_v13 = vadd.f32 %v502_v9, %v228_v8  ;;  %v230_v14 = vld [vmem:[%s772_s8 + $0x28] sm:$0xff]  ;;  %v231_v17 = vld [vmem:[%s772_s8 + $0x30] sm:$0xff]  ;;  %s282_s19 = scalar_lea.sflag [#allocation4], %s768_s4  ;;  %s581_s27 = sshra.s32 %s298_s26, 4  ;;  %s582_s27 = int_to_ptr.hbm [resolvable:$true] %s581_s27 }
  0x30   : > { %273 = vst [vmem:[%s221_s20] sm:$0xff] %v265_v4  ;;  %v503_v12 = vld [vmem:[%s780_s6 + $0x4] ss:$0 sm:$0xff]  ;;  %v504_v15 = vld [vmem:[%s780_s6 + $0x5] ss:$0 sm:$0xff]  ;;  %v505_v18 = vld [vmem:[%s780_s6 + $0x6] ss:$0 sm:$0xff]  ;;  %p588_p7 = scmp.lt.s32.totalorder %s582_s27, %s845_s2 }
  0x31   : > { %274 = vst [vmem:[%s221_s20 + $0x8] sm:$0xff] %v266_v7  ;;  %v269_v16 = vadd.f32 %v503_v12, %v229_v11  ;;  %v270_v19 = vadd.f32 %v504_v15, %v230_v14  ;;  %v232_v20 = vld [vmem:[%s772_s8 + $0x38] sm:$0xff]  ;;  %v506_v21 = vld [vmem:[%s780_s6 + $0x7] ss:$0 sm:$0xff]  ;;  %v271_v22 = vadd.f32 %v505_v18, %v231_v17  ;;  %s583_s28 = scalar_lea.hbm %s582_s27, 64  ;;  %s587_s3 = scalar_lea.hbm %s845_s2, 128 }
  0x32   : > { %275 = vst [vmem:[%s221_s20 + $0x10] sm:$0xff] %v267_v10  ;;  %v272_v23 = vadd.f32 %v506_v21, %v232_v20  ;;  %p584_p4 = scmp.ne.s32.totalorder %s582_s27, %s583_s28  ;;  %p589_p8 = scmp.lt.s32.totalorder %s587_s3, %s583_s28 }
  0x33   : > { %276 = vst [vmem:[%s221_s20 + $0x18] sm:$0xff] %v268_v13 }
  0x34   : > { %277 = vst [vmem:[%s221_s20 + $0x20] sm:$0xff] %v269_v16  ;;  %p585_p5 = pnand %p584_p4, %p727_p9  ;;  %p590_p10 = por %p589_p8, %p588_p7 }
  0x35   : > { %278 = vst [vmem:[%s221_s20 + $0x28] sm:$0xff] %v270_v19 }
  0x36   : > { %279 = vst [vmem:[%s221_s20 + $0x30] sm:$0xff] %v271_v22  ;;  %p586_p6 = pneg %p585_p5 }
  0x37   : > { %280 = vst [vmem:[%s221_s20 + $0x38] sm:$0xff] %v272_v23 }
  0x38   : > { %p591_p13 = pnand %p590_p10, %p586_p6 }
  0x3a   : > { %594 = shalt.err (!%p591_p13)
}
  0x3b   : > { %s659_s4 = smov 128   ;;  %s660_s8 = smov 8  }
  0x3c   : > { %430 = dma.vmem_to_hbm [thread:$0]  (%p727_p9), %s296_s12, 1024, %s298_s26, %s282_s19, %s659_s4, %s659_s4, %s660_s8  }
  0x3d PF: > { %s312_s0 = sand.u32 1, %s633_s9   ;;  %p440_p0 = pnand %p409_p12, %p734_p11 }
  0x3e   : > { %s313_s25 = scalar_lea.sflag [#allocation4], %s312_s0 }
  0x3f   : > { %p441_p1 = pneg %p440_p0 }
  0x41   : > { %628 = dma.done.wait (%p441_p1), %s313_s25, 1024  }
  0x42   : > { %630 = vsyncadd (%p441_p1), %s313_s25, 4294966272  ;;  %s21_s14 = sadd.s32 1, %s653_s14   ;;  %s853_s9 = smov %s637_s10 }
  0x43   : > { %p18_p2 = scmp.ge.s32.totalorder %s21_s14, 4   ;;  %s854_s10 = smov %s641_s11 }
  0x44   : > { %s855_s11 = smov %s732_s23  ;;  %s856_s12 = smov %s649_s13 }
  0x45   : > { %s857_s13 = smov %s859_s17  ;;  %20 = sbr.rel (!%p18_p2) target bundleno = 10 (0xa), region = 86 }
  0x4a   :  { %319 = vsyncpa [#allocation3], 1 }
  0x4b   :  { %321 = vsyncpa [#allocation3 + $0x1], 1 }
  0x4c   :  { %322 = vsyncpa [#allocation6], 1 }
  0x4d   :  { %324 = vsyncpa [#allocation6 + $0x1], 1 }
  0x4e   :  { %325 = vsyncpa [#allocation4], 1 }
  0x4f   :  { %327 = vsyncpa [#allocation4 + $0x1], 1 }

</bundles_post_ra>
